<compile_context>
chip_gen: v5e
topology: v5e:2x2
jax: 0.10.0
libtpu: 0.0.40
codegen_flags: <defaults>
</compile_context>

<pallas_src>
import jax
import jax.numpy as jnp
from jax.experimental import pallas as pl
from jax.experimental.pallas import tpu as pltpu


def _pos_emb_copy_kernel(pe_ref, out_ref):
    # pe_ref : (TR, C) tile of the lane-dense reshaped embedding table
    # out_ref: (TR, C) tile of the output for the current batch index
    out_ref[...] = pe_ref[...]


def _device_budgets():
    """Generation-aware block / VMEM budgets derived from physical VMEM."""
    try:
        cap = int(pltpu.get_tpu_info().vmem_capacity_bytes)
    except Exception:
        cap = 64 << 20  # conservative fallback: v7x per-TensorCore VMEM
    # ~cap/8 per block, clamped to [4, 12] MiB (8 MiB on v7x, 12 MiB on v5e/v6e).
    target = max(4 << 20, min(12 << 20, cap // 8))
    # 2x input + 2x output double buffers = 4*target; keep <= ~60% of physical VMEM.
    limit = min(int(cap * 0.6), 4 * target + (16 << 20))
    limit = max(limit, 4 * target + (4 << 20))
    limit = min(limit, cap - (4 << 20))
    return target, int(limit)


def _choose_layout(max_len, d_model):
    """Pick a 2D layout (R, C) with R*C == max_len*d_model, preferring C to be
    a multiple of 128 so output stores are unmasked full-lane vst."""
    flat = max_len * d_model
    if d_model % 128 == 0:
        return max_len, d_model
    if flat % 128 == 0:
        cap = min(flat, 4096)
        best = 128
        c = 128
        while c <= cap:
            if flat % c == 0:
                best = c
            c += 128
        return flat // best, best
    # TODO(synk): non-128-divisible flat size takes the masked-store (~4x) writeback
    # cliff; could pad cols to 128 and slice, at the cost of an extra HBM copy.
    return max_len, d_model


def _divisors(n):
    out = []
    i = 1
    while i * i <= n:
        if n % i == 0:
            out.append(i)
            if i != n // i:
                out.append(n // i)
        i += 1
    return sorted(out)


def _pick_row_tile(num_rows, row_bytes, itemsize, target_bytes):
    """Row tile ~target_bytes per block, aligned to the dtype's sublane packing,
    preferring an even divisor of num_rows (no ragged last block)."""
    sub = max(8, 32 // max(1, itemsize))  # 8 for f32, 16 for bf16, 32 for int8/fp8
    desired = max(1, target_bytes // max(1, row_bytes))
    if desired >= num_rows:
        return num_rows
    best = 0
    for d in _divisors(num_rows):
        if d <= desired and d % sub == 0 and d > best:
            best = d
    if best > 0:
        return best
    # No aligned even divisor: round down to the sublane multiple (last block ragged).
    rows = max(sub, (desired // sub) * sub)
    return min(rows, num_rows)


def positional_embedding_forward(x, pe_weight):
    """Returns pe_weight broadcast/repeated over the batch dimension of x.

    x         : any array whose leading dim is the batch size
    pe_weight : (max_len, d_model) embedding table
    returns   : (batch, max_len, d_model), dtype of pe_weight
    """
    batch = x.shape[0]
    max_len, d_model = pe_weight.shape
    itemsize = jnp.dtype(pe_weight.dtype).itemsize

    rows, cols = _choose_layout(max_len, d_model)
    target_bytes, vmem_limit = _device_budgets()
    table2d = pe_weight.reshape(rows, cols)  # contiguous row-major reshape -> bitcast
    tile_rows = _pick_row_tile(rows, cols * itemsize, itemsize, target_bytes)
    n_row_blocks = pl.cdiv(rows, tile_rows)

    flat_elems = max_len * d_model
    cost = pl.CostEstimate(
        flops=0,
        transcendentals=0,
        # table read ~once (resident tile reused across batch) + full writeback
        bytes_accessed=itemsize * (flat_elems + batch * flat_elems),
    )

    if n_row_blocks >= 2:
        # Row axis sharded across TensorCores; batch sequential per core so the
        # resident table tile is reused (input block index unchanged -> no re-fetch).
        grid = (n_row_blocks, batch)
        in_specs = [pl.BlockSpec((tile_rows, cols), lambda l, b: (l, 0))]
        out_specs = pl.BlockSpec((None, tile_rows, cols), lambda l, b: (b, l, 0))
        dims = ("parallel", "arbitrary")
    else:
        # Whole table fits in one tile; shard the batch axis across TensorCores.
        grid = (batch,)
        in_specs = [pl.BlockSpec((tile_rows, cols), lambda b: (0, 0))]
        out_specs = pl.BlockSpec((None, tile_rows, cols), lambda b: (b, 0, 0))
        dims = ("parallel",)

    # TODO(synk): optional v7x rework — out_specs=pl.ANY + per-batch
    # make_async_copy from the resident tile to batch-strided HBM destinations,
    # dropping the VMEM->VMEM copy and the output double buffers.

    out3d = pl.pallas_call(
        _pos_emb_copy_kernel,
        out_shape=jax.ShapeDtypeStruct((batch, rows, cols), pe_weight.dtype),
        grid_spec=pltpu.PrefetchScalarGridSpec(
            num_scalar_prefetch=0,
            grid=grid,
            in_specs=in_specs,
            out_specs=out_specs,
        ),
        compiler_params=pltpu.CompilerParams(
            dimension_semantics=dims,
            vmem_limit_bytes=vmem_limit,
        ),
        cost_estimate=cost,
    )(table2d)

    return out3d.reshape(batch, max_len, d_model)


if __name__ == "__main__":
    # Small deterministic setup
    max_len, d_model = 8, 32
    batch, seq = 2, 8

    key = jax.random.PRNGKey(0)
    k_w, k_x = jax.random.split(key)

    # nn.Embedding default init: weight ~ N(0, 1)
    pe_weight = jax.random.normal(k_w, (max_len, d_model), dtype=jnp.float32)

    # Dummy input tokens; only the batch size matters for the forward pass
    x = jax.random.randint(k_x, (batch, seq), 0, max_len, dtype=jnp.int32)

    out = positional_embedding_forward(x, pe_weight)
    out = jax.block_until_ready(out)

    # Reference check: repeat along batch (bit-exact copy)
    ref = jnp.broadcast_to(pe_weight[None], (batch, max_len, d_model))
    assert out.shape == (batch, max_len, d_model)
    assert out.dtype == jnp.float32
    assert jnp.array_equal(out, ref)

    print("KERNEL_OK")
</pallas_src>

<mosaic_0001>
module attributes {stable_mosaic.version = 11 : i64} {
  func.func @_pos_emb_copy_kernel(%arg0: i32, %arg1: memref<1x256xf32, #tpu.memory_space<vmem>>, %arg2: memref<1x1x256xf32, #tpu.memory_space<vmem>>) attributes {dimension_semantics = [#tpu.dimension_semantics<parallel>], iteration_bounds = array<i64: 2>, scalar_prefetch = 0 : i64, scratch_operands = 0 : i64, tpu.core_type = #tpu.core_type<tc>, window_params = [{pipeline_mode = #tpu.pipeline_mode<synchronous>, transform_indices = @transform_0, window_bounds = array<i64: 1, 256>}, {transform_indices = @transform_1, window_bounds = array<i64: 1, 1, 256>}]} {
    %c0 = arith.constant 0 : index
    %c0_0 = arith.constant 0 : index
    %0 = vector.load %arg1[%c0, %c0_0] : memref<1x256xf32, #tpu.memory_space<vmem>>, vector<1x256xf32>
    %c0_1 = arith.constant 0 : index
    %c0_2 = arith.constant 0 : index
    %c0_3 = arith.constant 0 : index
    %1 = vector.load %arg2[%c0_1, %c0_2, %c0_3] : memref<1x1x256xf32, #tpu.memory_space<vmem>>, vector<1x1x256xf32>
    %2 = vector.shape_cast %1 : vector<1x1x256xf32> to vector<1x256xf32>
    %3 = vector.shape_cast %0 : vector<1x256xf32> to vector<1x1x256xf32>
    tpu.vector_store %arg2[%c0_1, %c0_2, %c0_3], %3 {strides = array<i32>} : memref<1x1x256xf32, #tpu.memory_space<vmem>>, vector<1x1x256xf32>,
    return
  }
  func.func @transform_0(%arg0: i32) -> (i32, i32) {
    %c0_i32 = arith.constant 0 : i32
    %c0_i32_0 = arith.constant 0 : i32
    %c0_i32_1 = arith.constant 0 : i32
    return %c0_i32, %c0_i32_0 : i32, i32
  }
  func.func @transform_1(%arg0: i32) -> (i32, i32, i32) {
    %c0_i32 = arith.constant 0 : i32
    %c0_i32_0 = arith.constant 0 : i32
    %c0_i32_1 = arith.constant 0 : i32
    return %arg0, %c0_i32, %c0_i32_0 : i32, i32, i32
  }
}

</mosaic_0001>

<bundles_post_ra>
// kernel: tpu_custom_call.1
= control target key start
LH: loop header
LB: loop body
LE: loop exit
PB: predicated region body
PF: predicated region fallthrough
CT: control target
= control target key end

     0   :  { %6 = vsyncpa [#allocation3], 0  ;;  %s444_s0 = inlined_call_operand.hbm [shape: f32[1,256], index: 0, kind: input, shape index: {}]   ;;  %s445_s1 = inlined_call_operand.hbm [shape: f32[2,1,256], index: 1, kind: output, shape index: {}]  }
   0x1   :  { %7 = vsyncpa [#allocation4], 0 }
   0x2   :  { %9 = vsyncpa [#allocation4 + $0x1], 0  ;;  %s360_s6 = smov 0   ;;  %s362_s7 = smov 0  }
   0x3   :  { %s364_s8 = smov 0   ;;  %s366_s9 = smov 0  }
   0x4 LB: > { %s381_s10 = sadd.s32 4294967295, %s347_s9   ;;  %s191_s11 = sadd.s32 4294967294, %s347_s9   ;;  %s347_s9 = sphi %s366_s9, %s451_s9   ;;  %s343_s8 = sphi %s364_s8, %s450_s8   ;;  %s339_s7 = sphi %s362_s7, %s449_s7   ;;  %s335_s6 = sphi %s360_s6, %s448_s6  }
   0x5   : > { %s385_s12 = sadd.s32 1, %s347_s9   ;;  %s43_s13 = sadd.s32 1, %s343_s8 }
   0x6   : > { %s40_s14 = ssub.s32 %s347_s9, %s385_s12  ;;  %p53_p0 = scmp.ne.s32.totalorder %s343_s8, %s339_s7 }
   0x7   : > { %p41_p1 = scmp.eq.s32.totalorder %s40_s14, 0  ;;  %p54_p2 = scmp.eq.s32.totalorder %s381_s10, 1 }
   0x8   : > { %p59_p3 = scmp.ne.s32.totalorder %s339_s7, %s335_s6  ;;  %p60_p4 = scmp.eq.s32.totalorder %s191_s11, 1 }
   0x9   : > { %s396_s15 = scalar_select %p41_p1, %s343_s8, %s43_s13  }
   0xa   : > { %p398_p5 = por %p54_p2, %p53_p0  ;;  %p402_p6 = por %p60_p4, %p59_p3 }
   0xb   : > { %p192_p7 = scmp.ge.s32.totalorder %s347_s9, 1  ;;  %p67_p8 = scmp.lt.s32.totalorder %s347_s9, 3 }
   0xc   : > { %p215_p9 = scmp.eq.s32.totalorder %s381_s10, 0  ;;  %s79_s20 = sshll.u32 %s444_s0, 4  ;;  %s80_s20 = int_to_ptr.hbm [resolvable:$true] %s79_s20 }
   0xd   : > { %p68_p10 = pnand %p192_p7, %p67_p8  ;;  %s349_s21 = smov [#allocation2]  }
   0xe   : > { %s81_s22 = sshll.u32 %s349_s21, 4  ;;  %s82_s22 = int_to_ptr.vmem [resolvable:$true] %s81_s22 }
   0xf   : > { %p207_p11 = pneg %p68_p10  ;;  %94 = sbr.rel (%p68_p10) target bundleno = 37 (0x25), region = 24 }
  0x11   : > { %p208_p12 = pnand %p215_p9, %p207_p11 }
  0x13   : > { %210 = dma.hbm_to_vmem [thread:$0]  (!%p208_p12), %s80_s20, 32, %s82_s22, [#allocation3]  }
  0x14   : > { %326 = dma.done.wait (%p215_p9), [#allocation3], 32  }
  0x15   : > { %328 = vsyncadd (%p215_p9), [#allocation3], 4294967264  ;;  %s107_s23 = sand.u32 1, %s339_s7   ;;  %s198_s24 = sshll.u32 %s381_s10, 1  ;;  %v111_v0 = vlaneseq  ;;  %v110_v1 = vld [vmem:[#allocation2] sm:$0x3] }
  0x16   : > { %s196_s25 = sshll.u32 %s107_s23, 1  ;;  %s127_s28 = scalar_lea.hbm %s445_s1, %s198_s24 }
  0x17   : > { %s109_s29 = scalar_lea.vmem [#allocation5], %s196_s25  ;;  %s131_s2 = sshll.u32 %s127_s28, 4  ;;  %vm113_vm0 = vcmp.lt.s32.totalorder %v111_v0, 256  ;;  %s132_s2 = int_to_ptr.hbm [resolvable:$true] %s131_s2 }
  0x18   : > { %s129_s30 = sshll.u32 %s109_s29, 4  ;;  %115 = vst.msk [vmem:[%s109_s29] sm:$0x3] %vm113_vm0, %v110_v1  ;;  %s117_s3 = scalar_lea.sflag [#allocation4], %s107_s23  ;;  %s130_s30 = int_to_ptr.vmem [resolvable:$true] %s129_s30 }
  0x19   : > { %s295_s4 = sshra.s32 %s132_s2, 4  ;;  %s301_s13 = scalar_lea.hbm %s445_s1, 4  ;;  %s296_s4 = int_to_ptr.hbm [resolvable:$true] %s295_s4 }
  0x1a   : > { %s297_s5 = scalar_lea.hbm %s296_s4, 2  ;;  %p302_p2 = scmp.lt.s32.totalorder %s296_s4, %s445_s1 }
  0x1b   : > { %p298_p13 = scmp.ne.s32.totalorder %s296_s4, %s297_s5  ;;  %p303_p3 = scmp.lt.s32.totalorder %s301_s13, %s297_s5 }
  0x1d   : > { %p299_p0 = pnand %p298_p13, %p398_p5  ;;  %p304_p4 = por %p303_p3, %p302_p2 }
  0x1f   : > { %p300_p1 = pneg %p299_p0 }
  0x21   : > { %p305_p7 = pnand %p304_p4, %p300_p1 }
  0x23   : > { %308 = shalt.err (!%p305_p7)
}
  0x24   : > { %205 = dma.vmem_to_hbm [thread:$0]  (%p398_p5), %s130_s30, 32, %s132_s2, %s117_s3  }
  0x25 PF: > { %p217_p8 = scmp.ge.s32.totalorder %s347_s9, 2  ;;  %s143_s19 = sand.u32 1, %s335_s6  }
  0x26   : > { %s144_s20 = scalar_lea.sflag [#allocation4], %s143_s19 }
  0x27   : > { %p212_p9 = pnand %p217_p8, %p402_p6 }
  0x29   : > { %p213_p10 = pneg %p212_p9 }
  0x2b   : > { %330 = dma.done.wait (%p213_p10), %s144_s20, 32  }
  0x2c   : > { %332 = vsyncadd (%p213_p10), %s144_s20, 4294967264  ;;  %p12_p11 = scmp.ge.s32.totalorder %s385_s12, 4   ;;  %s448_s6 = smov %s339_s7 }
  0x2d   : > { %s449_s7 = smov %s343_s8  ;;  %s450_s8 = smov %s396_s15 }
  0x2e   : > { %s451_s9 = smov %s385_s12  ;;  %14 = sbr.rel (!%p12_p11) target bundleno = 4 (0x4), region = 61 }
  0x33   :  { %150 = vsyncpa [#allocation3], 1 }
  0x34   :  { %152 = vsyncpa [#allocation3 + $0x1], 1 }
  0x35   :  { %153 = vsyncpa [#allocation4], 1 }
  0x36   :  { %155 = vsyncpa [#allocation4 + $0x1], 1 }

</bundles_post_ra>
